<compile_context>
chip_gen: v7x
topology: tpu7x:2x2x1
jax: 0.10.0
libtpu: 0.0.40
codegen_flags: <defaults>
</compile_context>

<pallas_src>
import functools

import jax
import jax.numpy as jnp
from jax import lax
from jax.experimental import pallas as pl
from jax.experimental.pallas import tpu as pltpu


def _global_attention_patch_kernel(
    x_ref, y16_ref, m_ref,
    wq_ref, bq_ref, wk_ref, bk_ref, wv_ref, bv_ref, gamma_ref,
    o_ref,
    *, batch_block,
):
    """Per grid step: process a (batch_block, C, N) slab of x / y / m into out."""
    gamma = gamma_ref[0]                       # scalar read from SMEM
    wq = wq_ref[...]                           # (C, C) bf16
    wk = wk_ref[...]
    wv = wv_ref[...]
    bq = bq_ref[...]                           # (C, 1) f32
    bk = bk_ref[...]
    bv = bv_ref[...]

    # Static (unrolled) loop over the batches in this block; only one batch's
    # intermediates are live at a time (keeps the vreg/VMEM high-water mark low).
    for b in range(batch_block):
        xb = x_ref[b]                          # (C, N) f32 (epilogue needs it exactly)
        mb = m_ref[b]                          # (C, N) f32
        xb16 = xb.astype(jnp.bfloat16)

        # 1x1 convs == channel-mixing matmuls: bf16 operands, f32 accumulation.
        q = jnp.dot(wq, xb16, preferred_element_type=jnp.float32) + bq        # (C, N)
        k = jnp.dot(wk, y16_ref[b], preferred_element_type=jnp.float32) + bk  # (C, N)

        # channel_correlation = q @ k^T: contract the spatial axis directly on the
        # MXU (no transpose / relayout of k).
        cc = lax.dot_general(
            q.astype(jnp.bfloat16), k.astype(jnp.bfloat16),
            dimension_numbers=(((1,), (1,)), ((), ())),
            preferred_element_type=jnp.float32)                               # (C, C)

        # Logits = cc @ m_r, kept in f32 (they feed the softmax).
        logits = jnp.dot(cc, mb, preferred_element_type=jnp.float32)          # (C, N)

        # Softmax over the spatial axis (f32); EUP approx reciprocal + 1 Newton step.
        lmax = jnp.max(logits, axis=-1, keepdims=True)
        e = jnp.exp(logits - lmax)
        s = jnp.sum(e, axis=-1, keepdims=True)
        r = pl.reciprocal(s, approx=True)
        r = r * (2.0 - s * r)
        energy = e * r                                                        # (C, N)

        # Value projection just before use keeps the live set small.
        v = jnp.dot(wv, xb16, preferred_element_type=jnp.float32) + bv        # (C, N)
        attended = energy * v

        o_ref[b] = xb * mb + gamma * (1.0 - mb) * attended


def _pick_batch_block(B, C, N, budget_bytes=8 * 2**20, max_unroll=8):
    """Largest divisor of B whose block fits a modest VMEM budget (and small unroll)."""
    per_batch = C * N * 4 * 12   # in/out blocks (double-buffered) + f32 intermediates
    cap = max(1, min(max_unroll, budget_bytes // max(per_batch, 1)))
    bb = 1
    for d in range(1, B + 1):
        if B % d == 0 and d <= cap:
            bb = d
    return bb


def global_attention_patch(x, y, m, wq, bq, wk, bk, wv, bv, gamma):
    """x, y, m: (B, C, H, W) float32. Returns (B, C, H, W) float32."""
    B, C, H, W = x.shape
    N = H * W
    bf16 = jnp.bfloat16

    xf = x.reshape(B, C, N)                    # f32 (needed exactly in the epilogue)
    yf16 = y.reshape(B, C, N).astype(bf16)     # only feeds the key projection
    mf = m.reshape(B, C, N)                    # f32

    wq16 = wq.astype(bf16)
    wk16 = wk.astype(bf16)
    wv16 = wv.astype(bf16)
    bq2 = bq.reshape(C, 1)
    bk2 = bk.reshape(C, 1)
    bv2 = bv.reshape(C, 1)
    gamma1 = gamma.reshape(1).astype(jnp.float32)

    bb = _pick_batch_block(B, C, N)
    grid = (B // bb,)

    per_batch_spec = pl.BlockSpec((bb, C, N), lambda g: (g, 0, 0))
    weight_spec = pl.BlockSpec((C, C), lambda g: (0, 0))
    bias_spec = pl.BlockSpec((C, 1), lambda g: (0, 0))
    gamma_spec = pl.BlockSpec(memory_space=pltpu.MemorySpace.SMEM)

    # Explicit VMEM limit sized from the chosen block (clamped to v7x's 64 MiB).
    block_bytes = bb * C * N * (4 + 2 + 4 + 4) * 2   # x + y(bf16) + m + out, double-buffered
    block_bytes += bb * C * N * 4 * 8                # live f32 intermediates (upper bound)
    vmem_limit = int(min(64 * 2**20, max(32 * 2**20, 2 * block_bytes)))

    out_flat = pl.pallas_call(
        functools.partial(_global_attention_patch_kernel, batch_block=bb),
        out_shape=jax.ShapeDtypeStruct((B, C, N), jnp.float32),
        grid_spec=pltpu.PrefetchScalarGridSpec(
            num_scalar_prefetch=0,
            grid=grid,
            in_specs=[
                per_batch_spec,   # x     (f32)
                per_batch_spec,   # y     (bf16)
                per_batch_spec,   # m     (f32)
                weight_spec,      # Wq    (bf16)
                bias_spec,        # bq
                weight_spec,      # Wk    (bf16)
                bias_spec,        # bk
                weight_spec,      # Wv    (bf16)
                bias_spec,        # bv
                gamma_spec,       # gamma (SMEM scalar)
            ],
            out_specs=per_batch_spec,
        ),
        compiler_params=pltpu.CompilerParams(
            dimension_semantics=("parallel",),
            vmem_limit_bytes=vmem_limit,
        ),
    )(xf, yf16, mf, wq16, bq2, wk16, bk2, wv16, bv2, gamma1)

    return out_flat.reshape(B, C, H, W)


def _reference(x, y, m, wq, bq, wk, bk, wv, bv, gamma):
    """Pure-JAX reference mirroring the kernel's mixed precision (bf16 matmul
    operands with f32 accumulation; f32 logits / softmax / epilogue)."""
    B, C, H, W = x.shape
    N = H * W
    bf16 = jnp.bfloat16
    f32 = jnp.float32
    xf = x.reshape(B, C, N)
    yf = y.reshape(B, C, N)
    mf = m.reshape(B, C, N)
    q = jnp.einsum("oc,bcn->bon", wq.astype(bf16), xf.astype(bf16),
                   preferred_element_type=f32) + bq[None, :, None]
    k = jnp.einsum("oc,bcn->bon", wk.astype(bf16), yf.astype(bf16),
                   preferred_element_type=f32) + bk[None, :, None]
    v = jnp.einsum("oc,bcn->bon", wv.astype(bf16), xf.astype(bf16),
                   preferred_element_type=f32) + bv[None, :, None]
    cc = jnp.einsum("bcn,bdn->bcd", q.astype(bf16), k.astype(bf16),
                    preferred_element_type=f32)                       # (B, C, C)
    logits = jnp.einsum("bcd,bdn->bcn", cc, mf,
                        preferred_element_type=f32,
                        precision=lax.Precision.HIGHEST)              # (B, C, N)
    energy = jax.nn.softmax(logits, axis=-1)
    att = energy * v
    out = xf * mf + gamma * (1.0 - mf) * att
    return out.reshape(B, C, H, W)


if __name__ == "__main__":
    key = jax.random.PRNGKey(0)
    B, C, H, W = 2, 8, 16, 16

    keys = jax.random.split(key, 10)
    x = jax.random.normal(keys[0], (B, C, H, W), dtype=jnp.float32)
    y = jax.random.normal(keys[1], (B, C, H, W), dtype=jnp.float32)
    # m acts as a (soft) mask that also enters the bmm, so it is (B, C, H, W) in [0, 1].
    m = jax.random.uniform(keys[2], (B, C, H, W), dtype=jnp.float32)

    # 1x1 Conv2d parameters: weights (C, C), biases (C,). The 0.5/sqrt(C) std is close
    # to PyTorch's default (kaiming-uniform) Conv2d init scale.
    scale = 0.5 / jnp.sqrt(jnp.float32(C))
    wq = jax.random.normal(keys[3], (C, C), dtype=jnp.float32) * scale
    bq = jax.random.normal(keys[4], (C,), dtype=jnp.float32) * 0.1
    wk = jax.random.normal(keys[5], (C, C), dtype=jnp.float32) * scale
    bk = jax.random.normal(keys[6], (C,), dtype=jnp.float32) * 0.1
    wv = jax.random.normal(keys[7], (C, C), dtype=jnp.float32) * scale
    bv = jax.random.normal(keys[8], (C,), dtype=jnp.float32) * 0.1
    gamma = jnp.array([1.0], dtype=jnp.float32)

    out = global_attention_patch(x, y, m, wq, bq, wk, bk, wv, bv, gamma)
    out = jax.block_until_ready(out)

    ref = _reference(x, y, m, wq, bq, wk, bk, wv, bv, gamma)
    assert out.shape == (B, C, H, W)
    # Kernel and reference share the same bf16 operand rounding for the hot matmuls;
    # the remaining differences (f32 accumulation order, approximate reciprocal) are
    # amplified by the softmax over large-magnitude logits, hence the tolerance.
    assert jnp.allclose(out, ref, atol=2e-2, rtol=2e-2), "mismatch vs reference"

    print("KERNEL_OK")
</pallas_src>

<mosaic_0001>
module attributes {stable_mosaic.version = 11 : i64} {
  func.func @_global_attention_patch_kernel(%arg0: i32, %arg1: memref<2x8x256xf32, #tpu.memory_space<vmem>>, %arg2: memref<2x8x256xbf16, #tpu.memory_space<vmem>>, %arg3: memref<2x8x256xf32, #tpu.memory_space<vmem>>, %arg4: memref<8x8xbf16, #tpu.memory_space<vmem>>, %arg5: memref<8x1xf32, #tpu.memory_space<vmem>>, %arg6: memref<8x8xbf16, #tpu.memory_space<vmem>>, %arg7: memref<8x1xf32, #tpu.memory_space<vmem>>, %arg8: memref<8x8xbf16, #tpu.memory_space<vmem>>, %arg9: memref<8x1xf32, #tpu.memory_space<vmem>>, %arg10: memref<1xf32, #tpu.memory_space<smem>>, %arg11: memref<2x8x256xf32, #tpu.memory_space<vmem>>) attributes {dimension_semantics = [#tpu.dimension_semantics<parallel>], iteration_bounds = array<i64: 1>, scalar_prefetch = 0 : i64, scratch_operands = 0 : i64, tpu.core_type = #tpu.core_type<tc>, window_params = [{transform_indices = @transform_0, window_bounds = array<i64: 2, 8, 256>}, {transform_indices = @transform_1, window_bounds = array<i64: 2, 8, 256>}, {transform_indices = @transform_2, window_bounds = array<i64: 2, 8, 256>}, {pipeline_mode = #tpu.pipeline_mode<synchronous>, transform_indices = @transform_3, window_bounds = array<i64: 8, 8>}, {pipeline_mode = #tpu.pipeline_mode<synchronous>, transform_indices = @transform_4, window_bounds = array<i64: 8, 1>}, {pipeline_mode = #tpu.pipeline_mode<synchronous>, transform_indices = @transform_5, window_bounds = array<i64: 8, 8>}, {pipeline_mode = #tpu.pipeline_mode<synchronous>, transform_indices = @transform_6, window_bounds = array<i64: 8, 1>}, {pipeline_mode = #tpu.pipeline_mode<synchronous>, transform_indices = @transform_7, window_bounds = array<i64: 8, 8>}, {pipeline_mode = #tpu.pipeline_mode<synchronous>, transform_indices = @transform_8, window_bounds = array<i64: 8, 1>}, {transform_indices = @transform_9, window_bounds = array<i64: 1>}, {transform_indices = @transform_10, window_bounds = array<i64: 2, 8, 256>}]} {
    %c0 = arith.constant 0 : index
    %0 = memref.load %arg10[%c0] : memref<1xf32, #tpu.memory_space<smem>>
    %c0_0 = arith.constant 0 : index
    %c0_1 = arith.constant 0 : index
    %1 = vector.load %arg4[%c0_0, %c0_1] : memref<8x8xbf16, #tpu.memory_space<vmem>>, vector<8x8xbf16>
    %c0_2 = arith.constant 0 : index
    %c0_3 = arith.constant 0 : index
    %2 = vector.load %arg6[%c0_2, %c0_3] : memref<8x8xbf16, #tpu.memory_space<vmem>>, vector<8x8xbf16>
    %c0_4 = arith.constant 0 : index
    %c0_5 = arith.constant 0 : index
    %3 = vector.load %arg8[%c0_4, %c0_5] : memref<8x8xbf16, #tpu.memory_space<vmem>>, vector<8x8xbf16>
    %c0_6 = arith.constant 0 : index
    %c0_7 = arith.constant 0 : index
    %4 = vector.load %arg5[%c0_6, %c0_7] : memref<8x1xf32, #tpu.memory_space<vmem>>, vector<8x1xf32>
    %c0_8 = arith.constant 0 : index
    %c0_9 = arith.constant 0 : index
    %5 = vector.load %arg7[%c0_8, %c0_9] : memref<8x1xf32, #tpu.memory_space<vmem>>, vector<8x1xf32>
    %c0_10 = arith.constant 0 : index
    %c0_11 = arith.constant 0 : index
    %6 = vector.load %arg9[%c0_10, %c0_11] : memref<8x1xf32, #tpu.memory_space<vmem>>, vector<8x1xf32>
    %c0_12 = arith.constant 0 : index
    %c0_13 = arith.constant 0 : index
    %c0_14 = arith.constant 0 : index
    %7 = vector.load %arg1[%c0_12, %c0_13, %c0_14] : memref<2x8x256xf32, #tpu.memory_space<vmem>>, vector<1x8x256xf32>
    %8 = vector.shape_cast %7 : vector<1x8x256xf32> to vector<8x256xf32>
    %c0_15 = arith.constant 0 : index
    %c0_16 = arith.constant 0 : index
    %c0_17 = arith.constant 0 : index
    %9 = vector.load %arg3[%c0_15, %c0_16, %c0_17] : memref<2x8x256xf32, #tpu.memory_space<vmem>>, vector<1x8x256xf32>
    %10 = vector.shape_cast %9 : vector<1x8x256xf32> to vector<8x256xf32>
    %11 = arith.truncf %8 : vector<8x256xf32> to vector<8x256xbf16>
    %cst = arith.constant dense<0.000000e+00> : vector<8x256xf32>
    %12 = tpu.matmul %1, %11, %cst {dimension_numbers = #tpu.dot_dimension_numbers<[1], [0], [0], [1], [0, 0, 1, 1], [], []>} : vector<8x8xbf16>, vector<8x256xbf16>, vector<8x256xf32> -> vector<8x256xf32>
    %13 = vector.broadcast %4 : vector<8x1xf32> to vector<8x256xf32>
    %14 = arith.addf %12, %13 : vector<8x256xf32>
    %c0_18 = arith.constant 0 : index
    %c0_19 = arith.constant 0 : index
    %c0_20 = arith.constant 0 : index
    %15 = vector.load %arg2[%c0_18, %c0_19, %c0_20] : memref<2x8x256xbf16, #tpu.memory_space<vmem>>, vector<1x8x256xbf16>
    %16 = vector.shape_cast %15 : vector<1x8x256xbf16> to vector<8x256xbf16>
    %cst_21 = arith.constant dense<0.000000e+00> : vector<8x256xf32>
    %17 = tpu.matmul %2, %16, %cst_21 {dimension_numbers = #tpu.dot_dimension_numbers<[1], [0], [0], [1], [0, 0, 1, 1], [], []>} : vector<8x8xbf16>, vector<8x256xbf16>, vector<8x256xf32> -> vector<8x256xf32>
    %18 = vector.broadcast %5 : vector<8x1xf32> to vector<8x256xf32>
    %19 = arith.addf %17, %18 : vector<8x256xf32>
    %20 = arith.truncf %14 : vector<8x256xf32> to vector<8x256xbf16>
    %21 = arith.truncf %19 : vector<8x256xf32> to vector<8x256xbf16>
    %cst_22 = arith.constant dense<0.000000e+00> : vector<8x8xf32>
    %22 = tpu.matmul %20, %21, %cst_22 {dimension_numbers = #tpu.dot_dimension_numbers<[1], [1], [0], [0], [0, 0, 1, 0], [], []>} : vector<8x256xbf16>, vector<8x256xbf16>, vector<8x8xf32> -> vector<8x8xf32>
    %cst_23 = arith.constant dense<0.000000e+00> : vector<8x256xf32>
    %23 = tpu.matmul %22, %10, %cst_23 {dimension_numbers = #tpu.dot_dimension_numbers<[1], [0], [0], [1], [0, 0, 1, 1], [], []>} : vector<8x8xf32>, vector<8x256xf32>, vector<8x256xf32> -> vector<8x256xf32>
    %cst_24 = arith.constant dense<0xFF800000> : vector<8xf32>
    %24 = vector.multi_reduction <maximumf>, %23, %cst_24 [1] : vector<8x256xf32> to vector<8xf32>
    %25 = vector.shape_cast %24 : vector<8xf32> to vector<8x1xf32>
    %26 = vector.broadcast %25 : vector<8x1xf32> to vector<8x256xf32>
    %27 = arith.subf %23, %26 : vector<8x256xf32>
    %28 = math.exp %27 : vector<8x256xf32>
    %cst_25 = arith.constant dense<0.000000e+00> : vector<8xf32>
    %29 = vector.multi_reduction <add>, %28, %cst_25 [1] : vector<8x256xf32> to vector<8xf32>
    %30 = vector.shape_cast %29 : vector<8xf32> to vector<8x1xf32>
    %31 = tpu.reciprocal %30 {approx = true} : vector<8x1xf32> -> vector<8x1xf32>
    %32 = arith.mulf %30, %31 : vector<8x1xf32>
    %cst_26 = arith.constant 2.000000e+00 : f32
    %33 = vector.broadcast %cst_26 : f32 to vector<8x1xf32>
    %34 = arith.subf %33, %32 : vector<8x1xf32>
    %35 = arith.mulf %31, %34 : vector<8x1xf32>
    %36 = vector.broadcast %35 : vector<8x1xf32> to vector<8x256xf32>
    %37 = arith.mulf %28, %36 : vector<8x256xf32>
    %cst_27 = arith.constant dense<0.000000e+00> : vector<8x256xf32>
    %38 = tpu.matmul %3, %11, %cst_27 {dimension_numbers = #tpu.dot_dimension_numbers<[1], [0], [0], [1], [0, 0, 1, 1], [], []>} : vector<8x8xbf16>, vector<8x256xbf16>, vector<8x256xf32> -> vector<8x256xf32>
    %39 = vector.broadcast %6 : vector<8x1xf32> to vector<8x256xf32>
    %40 = arith.addf %38, %39 : vector<8x256xf32>
    %41 = arith.mulf %37, %40 : vector<8x256xf32>
    %42 = arith.mulf %8, %10 : vector<8x256xf32>
    %cst_28 = arith.constant 1.000000e+00 : f32
    %43 = vector.broadcast %cst_28 : f32 to vector<8x256xf32>
    %44 = arith.subf %43, %10 : vector<8x256xf32>
    %45 = vector.broadcast %0 : f32 to vector<8x256xf32>
    %46 = arith.mulf %45, %44 : vector<8x256xf32>
    %47 = arith.mulf %46, %41 : vector<8x256xf32>
    %48 = arith.addf %42, %47 : vector<8x256xf32>
    %c0_29 = arith.constant 0 : index
    %c0_30 = arith.constant 0 : index
    %c0_31 = arith.constant 0 : index
    %49 = vector.load %arg11[%c0_29, %c0_30, %c0_31] : memref<2x8x256xf32, #tpu.memory_space<vmem>>, vector<1x8x256xf32>
    %50 = vector.shape_cast %49 : vector<1x8x256xf32> to vector<8x256xf32>
    %51 = vector.shape_cast %48 : vector<8x256xf32> to vector<1x8x256xf32>
    tpu.vector_store %arg11[%c0_29, %c0_30, %c0_31], %51 {strides = array<i32>} : memref<2x8x256xf32, #tpu.memory_space<vmem>>, vector<1x8x256xf32>,
    %c1 = arith.constant 1 : index
    %c0_32 = arith.constant 0 : index
    %c0_33 = arith.constant 0 : index
    %52 = vector.load %arg1[%c1, %c0_32, %c0_33] : memref<2x8x256xf32, #tpu.memory_space<vmem>>, vector<1x8x256xf32>
    %53 = vector.shape_cast %52 : vector<1x8x256xf32> to vector<8x256xf32>
    %c1_34 = arith.constant 1 : index
    %c0_35 = arith.constant 0 : index
    %c0_36 = arith.constant 0 : index
    %54 = vector.load %arg3[%c1_34, %c0_35, %c0_36] : memref<2x8x256xf32, #tpu.memory_space<vmem>>, vector<1x8x256xf32>
    %55 = vector.shape_cast %54 : vector<1x8x256xf32> to vector<8x256xf32>
    %56 = arith.truncf %53 : vector<8x256xf32> to vector<8x256xbf16>
    %cst_37 = arith.constant dense<0.000000e+00> : vector<8x256xf32>
    %57 = tpu.matmul %1, %56, %cst_37 {dimension_numbers = #tpu.dot_dimension_numbers<[1], [0], [0], [1], [0, 0, 1, 1], [], []>} : vector<8x8xbf16>, vector<8x256xbf16>, vector<8x256xf32> -> vector<8x256xf32>
    %58 = vector.broadcast %4 : vector<8x1xf32> to vector<8x256xf32>
    %59 = arith.addf %57, %58 : vector<8x256xf32>
    %c1_38 = arith.constant 1 : index
    %c0_39 = arith.constant 0 : index
    %c0_40 = arith.constant 0 : index
    %60 = vector.load %arg2[%c1_38, %c0_39, %c0_40] : memref<2x8x256xbf16, #tpu.memory_space<vmem>>, vector<1x8x256xbf16>
    %61 = vector.shape_cast %60 : vector<1x8x256xbf16> to vector<8x256xbf16>
    %cst_41 = arith.constant dense<0.000000e+00> : vector<8x256xf32>
    %62 = tpu.matmul %2, %61, %cst_41 {dimension_numbers = #tpu.dot_dimension_numbers<[1], [0], [0], [1], [0, 0, 1, 1], [], []>} : vector<8x8xbf16>, vector<8x256xbf16>, vector<8x256xf32> -> vector<8x256xf32>
    %63 = vector.broadcast %5 : vector<8x1xf32> to vector<8x256xf32>
    %64 = arith.addf %62, %63 : vector<8x256xf32>
    %65 = arith.truncf %59 : vector<8x256xf32> to vector<8x256xbf16>
    %66 = arith.truncf %64 : vector<8x256xf32> to vector<8x256xbf16>
    %cst_42 = arith.constant dense<0.000000e+00> : vector<8x8xf32>
    %67 = tpu.matmul %65, %66, %cst_42 {dimension_numbers = #tpu.dot_dimension_numbers<[1], [1], [0], [0], [0, 0, 1, 0], [], []>} : vector<8x256xbf16>, vector<8x256xbf16>, vector<8x8xf32> -> vector<8x8xf32>
    %cst_43 = arith.constant dense<0.000000e+00> : vector<8x256xf32>
    %68 = tpu.matmul %67, %55, %cst_43 {dimension_numbers = #tpu.dot_dimension_numbers<[1], [0], [0], [1], [0, 0, 1, 1], [], []>} : vector<8x8xf32>, vector<8x256xf32>, vector<8x256xf32> -> vector<8x256xf32>
    %cst_44 = arith.constant dense<0xFF800000> : vector<8xf32>
    %69 = vector.multi_reduction <maximumf>, %68, %cst_44 [1] : vector<8x256xf32> to vector<8xf32>
    %70 = vector.shape_cast %69 : vector<8xf32> to vector<8x1xf32>
    %71 = vector.broadcast %70 : vector<8x1xf32> to vector<8x256xf32>
    %72 = arith.subf %68, %71 : vector<8x256xf32>
    %73 = math.exp %72 : vector<8x256xf32>
    %cst_45 = arith.constant dense<0.000000e+00> : vector<8xf32>
    %74 = vector.multi_reduction <add>, %73, %cst_45 [1] : vector<8x256xf32> to vector<8xf32>
    %75 = vector.shape_cast %74 : vector<8xf32> to vector<8x1xf32>
    %76 = tpu.reciprocal %75 {approx = true} : vector<8x1xf32> -> vector<8x1xf32>
    %77 = arith.mulf %75, %76 : vector<8x1xf32>
    %cst_46 = arith.constant 2.000000e+00 : f32
    %78 = vector.broadcast %cst_46 : f32 to vector<8x1xf32>
    %79 = arith.subf %78, %77 : vector<8x1xf32>
    %80 = arith.mulf %76, %79 : vector<8x1xf32>
    %81 = vector.broadcast %80 : vector<8x1xf32> to vector<8x256xf32>
    %82 = arith.mulf %73, %81 : vector<8x256xf32>
    %cst_47 = arith.constant dense<0.000000e+00> : vector<8x256xf32>
    %83 = tpu.matmul %3, %56, %cst_47 {dimension_numbers = #tpu.dot_dimension_numbers<[1], [0], [0], [1], [0, 0, 1, 1], [], []>} : vector<8x8xbf16>, vector<8x256xbf16>, vector<8x256xf32> -> vector<8x256xf32>
    %84 = vector.broadcast %6 : vector<8x1xf32> to vector<8x256xf32>
    %85 = arith.addf %83, %84 : vector<8x256xf32>
    %86 = arith.mulf %82, %85 : vector<8x256xf32>
    %87 = arith.mulf %53, %55 : vector<8x256xf32>
    %cst_48 = arith.constant 1.000000e+00 : f32
    %88 = vector.broadcast %cst_48 : f32 to vector<8x256xf32>
    %89 = arith.subf %88, %55 : vector<8x256xf32>
    %90 = vector.broadcast %0 : f32 to vector<8x256xf32>
    %91 = arith.mulf %90, %89 : vector<8x256xf32>
    %92 = arith.mulf %91, %86 : vector<8x256xf32>
    %93 = arith.addf %87, %92 : vector<8x256xf32>
    %c1_49 = arith.constant 1 : index
    %c0_50 = arith.constant 0 : index
    %c0_51 = arith.constant 0 : index
    %94 = vector.load %arg11[%c1_49, %c0_50, %c0_51] : memref<2x8x256xf32, #tpu.memory_space<vmem>>, vector<1x8x256xf32>
    %95 = vector.shape_cast %94 : vector<1x8x256xf32> to vector<8x256xf32>
    %96 = vector.shape_cast %93 : vector<8x256xf32> to vector<1x8x256xf32>
    tpu.vector_store %arg11[%c1_49, %c0_50, %c0_51], %96 {strides = array<i32>} : memref<2x8x256xf32, #tpu.memory_space<vmem>>, vector<1x8x256xf32>,
    return
  }
  func.func @transform_0(%arg0: i32) -> (i32, i32, i32) {
    %c0_i32 = arith.constant 0 : i32
    %c0_i32_0 = arith.constant 0 : i32
    %c0_i32_1 = arith.constant 0 : i32
    return %arg0, %c0_i32, %c0_i32_0 : i32, i32, i32
  }
  func.func @transform_1(%arg0: i32) -> (i32, i32, i32) {
    %c0_i32 = arith.constant 0 : i32
    %c0_i32_0 = arith.constant 0 : i32
    %c0_i32_1 = arith.constant 0 : i32
    return %arg0, %c0_i32, %c0_i32_0 : i32, i32, i32
  }
  func.func @transform_2(%arg0: i32) -> (i32, i32, i32) {
    %c0_i32 = arith.constant 0 : i32
    %c0_i32_0 = arith.constant 0 : i32
    %c0_i32_1 = arith.constant 0 : i32
    return %arg0, %c0_i32, %c0_i32_0 : i32, i32, i32
  }
  func.func @transform_3(%arg0: i32) -> (i32, i32) {
    %c0_i32 = arith.constant 0 : i32
    %c0_i32_0 = arith.constant 0 : i32
    %c0_i32_1 = arith.constant 0 : i32
    return %c0_i32, %c0_i32_0 : i32, i32
  }
  func.func @transform_4(%arg0: i32) -> (i32, i32) {
    %c0_i32 = arith.constant 0 : i32
    %c0_i32_0 = arith.constant 0 : i32
    %c0_i32_1 = arith.constant 0 : i32
    return %c0_i32, %c0_i32_0 : i32, i32
  }
  func.func @transform_5(%arg0: i32) -> (i32, i32) {
    %c0_i32 = arith.constant 0 : i32
    %c0_i32_0 = arith.constant 0 : i32
    %c0_i32_1 = arith.constant 0 : i32
    return %c0_i32, %c0_i32_0 : i32, i32
  }
  func.func @transform_6(%arg0: i32) -> (i32, i32) {
    %c0_i32 = arith.constant 0 : i32
    %c0_i32_0 = arith.constant 0 : i32
    %c0_i32_1 = arith.constant 0 : i32
    return %c0_i32, %c0_i32_0 : i32, i32
  }
  func.func @transform_7(%arg0: i32) -> (i32, i32) {
    %c0_i32 = arith.constant 0 : i32
    %c0_i32_0 = arith.constant 0 : i32
    %c0_i32_1 = arith.constant 0 : i32
    return %c0_i32, %c0_i32_0 : i32, i32
  }
  func.func @transform_8(%arg0: i32) -> (i32, i32) {
    %c0_i32 = arith.constant 0 : i32
    %c0_i32_0 = arith.constant 0 : i32
    %c0_i32_1 = arith.constant 0 : i32
    return %c0_i32, %c0_i32_0 : i32, i32
  }
  func.func @transform_9(%arg0: i32) -> i32 {
    %c0_i32 = arith.constant 0 : i32
    %c0_i32_0 = arith.constant 0 : i32
    return %c0_i32 : i32
  }
  func.func @transform_10(%arg0: i32) -> (i32, i32, i32) {
    %c0_i32 = arith.constant 0 : i32
    %c0_i32_0 = arith.constant 0 : i32
    %c0_i32_1 = arith.constant 0 : i32
    return %arg0, %c0_i32, %c0_i32_0 : i32, i32, i32
  }
}

</mosaic_0001>

<bundles_post_ra>
// kernel: tpu_custom_call.1
= control target key start
LH: loop header
LB: loop body
LE: loop exit
PB: predicated region body
PF: predicated region fallthrough
CT: control target
= control target key end

     0   :  { %16 = vsyncpa [#allocation4], 0  ;;  %s1062_s0 = inlined_call_operand.hbm [shape: f32[2,8,256], index: 0, kind: input, shape index: {}]   ;;  %s1063_s1 = inlined_call_operand.hbm [shape: bf16[2,8,256], index: 1, kind: input, shape index: {}]   ;;  %s1064_s2 = inlined_call_operand.vmem [shape: f32[2,8,256], index: 2, kind: input, shape index: {}]   ;;  %s1065_s3 = inlined_call_operand.vmem [shape: bf16[8,8], index: 3, kind: input, shape index: {}]   ;;  %s1066_s4 = inlined_call_operand.vmem [shape: f32[8,1], index: 4, kind: input, shape index: {}]   ;;  %s1067_s5 = inlined_call_operand.vmem [shape: bf16[8,8], index: 5, kind: input, shape index: {}]   ;;  %s1068_s6 = inlined_call_operand.vmem [shape: f32[8,1], index: 6, kind: input, shape index: {}]   ;;  %s1069_s7 = inlined_call_operand.vmem [shape: bf16[8,8], index: 7, kind: input, shape index: {}]   ;;  %s1070_s8 = inlined_call_operand.vmem [shape: f32[8,1], index: 8, kind: input, shape index: {}]   ;;  %s1071_s9 = inlined_call_operand.<no memory space> [shape: f32[1], index: 9, kind: input, shape index: {}]   ;;  %s1072_s10 = inlined_call_operand.hbm [shape: f32[2,8,256], index: 10, kind: output, shape index: {}]  }
   0x1   :  { %17 = vsyncpa [#allocation7], 0 }
   0x2   :  { %18 = vsyncpa [#allocation5], 0  ;;  %s835_s13 = smov [#allocation3]   ;;  %s763_s17 = scalar_lea.hbm %s1062_s0, 512 }
   0x3   :  { %s24_s14 = sshll.u32 %s835_s13, 4  ;;  %p764_p0 = scmp.ne.s32.totalorder %s1062_s0, %s763_s17  ;;  %s25_s14 = int_to_ptr.vmem [resolvable:$true] %s24_s14 }
   0x4   :  { %p767_p1 = scmp.lt.u32.totalorder %s763_s17, %s1062_s0 }
   0x6   :  { %p769_p2 = pnand %p767_p1, %p764_p0 }
   0x8   :  { %772 = shalt.err (!%p769_p2)
}
   0x9   :  { %s773_s22 = scalar_lea.vmem %s25_s14, 512  ;;  %p778_p4 = scmp.lt.s32.totalorder %s25_s14, %s25_s14 }
   0xa   :  { %p774_p3 = scmp.ne.s32.totalorder %s25_s14, %s773_s22  ;;  %p779_p5 = scmp.lt.s32.totalorder %s773_s22, %s773_s22 }
   0xc   :  { %p780_p6 = por %p779_p5, %p778_p4 }
   0xe   :  { %p781_p7 = pnand %p780_p6, %p774_p3 }
  0x10   :  { %784 = shalt.err (!%p781_p7)
}
  0x11   :  { %s836_s23 = smov 256   ;;  %s837_s24 = smov 16  }
  0x12   :  { %30 = dma.hbm_to_vmem [thread:$0]  %s1062_s0, 512, %s25_s14, [#allocation4], %s836_s23, %s836_s23, %s837_s24  }
  0x13   :  { %s838_s27 = smov [#allocation6]   ;;  %s785_s11 = scalar_lea.hbm %s1063_s1, 256 }
  0x14   :  { %s36_s28 = sshll.u32 %s838_s27, 4  ;;  %p786_p8 = scmp.ne.s32.totalorder %s1063_s1, %s785_s11  ;;  %s37_s28 = int_to_ptr.vmem [resolvable:$true] %s36_s28 }
  0x15   :  { %p789_p9 = scmp.lt.u32.totalorder %s785_s11, %s1063_s1 }
  0x17   :  { %p791_p10 = pnand %p789_p9, %p786_p8 }
  0x19   :  { %794 = shalt.err (!%p791_p10)
}
  0x1a   :  { %s795_s17 = scalar_lea.vmem %s37_s28, 256  ;;  %p800_p12 = scmp.lt.s32.totalorder %s37_s28, %s37_s28 }
  0x1b   :  { %p796_p11 = scmp.ne.s32.totalorder %s37_s28, %s795_s17  ;;  %p801_p13 = scmp.lt.s32.totalorder %s795_s17, %s795_s17 }
  0x1d   :  { %p802_p0 = por %p801_p13, %p800_p12 }
  0x1f   :  { %p803_p1 = pnand %p802_p0, %p796_p11 }
  0x21   :  { %806 = shalt.err (!%p803_p1)
}
  0x22   :  { %s839_s0 = smov 128   ;;  %s840_s14 = smov 8  }
  0x23   :  { %42 = dma.hbm_to_vmem [thread:$0]  %s1063_s1, 256, %s37_s28, [#allocation7], %s839_s0, %s839_s0, %s840_s14  }
  0x24   :  { %829 = dma.done.wait [#allocation4], 512  }
  0x25   :  { %830 = vsyncadd [#allocation4], 4294966784 }
  0x26   :  { %831 = dma.done.wait [#allocation7], 256  }
  0x27   :  { %832 = vsyncadd [#allocation7], 4294967040  ;;  %v841_v0 = vmov 0   ;;  %v930_v1 = vld [vmem:[#allocation3 + $0x8] sm:$0xff]  ;;  %vm88_vm0 = vcmask 1043456   ;;  %v136_v2 = vld [vmem:[#allocation6] sm:$0xff] }
  0x28   :  { %127 = vmatprep.mubr.bf16.mxu0 %v841_v0  ;;  %188 = vmatprep.mubr.bf16.mxu1 %v841_v0  ;;  %v932_v3 = vld [vmem:[#allocation3] sm:$0xff]  ;;  %v78_v4 = vpack.c.bf16 %v930_v1, %v930_v1  ;;  %v719_v5 = vcombine.high %v136_v2, %v136_v2  ;;  %v718_v7 = vcombine.low %v136_v2, %v136_v2  ;;  %vm84_vm1 = vcmask 64512   ;;  %v962_v14 = vld [vmem:[%s1064_s2 + $0x8] sm:$0xff]  ;;  %v977_v23 = vld [vmem:[#allocation3 + $0x18] sm:$0xff] }
  0x29   :  { %745 = vset.pattern.permute.xlu0 %v841_v0  ;;  %746 = vset.pattern.permute.xlu1 %v841_v0  ;;  %v77_v6 = vpack.c.bf16 %v932_v3, %v932_v3  ;;  %v71_v8 = vld [vmem:[%s1068_s6] sm:$0xff]  ;;  %v404_v32 = vpack.c.bf16 %v977_v23, %v977_v23  ;;  %v983_v34 = vld [vmem:[#allocation3 + $0x10] sm:$0xff]  ;;  %v842_v39 = vmov 0.0   ;;  %v453_v40 = vld [vmem:[#allocation6 + $0x8] sm:$0xff] }
  0x2a   :  { %139 = vperm.xlu0 %745, %v71_v8   ;;  %716 = vmatprep.subr.msk.bf16.mxu0 %vm88_vm0, %v78_v4  ;;  %v151_v10 = vsel %vm88_vm0, %v718_v7, 0  ;;  %v70_v11 = vld [vmem:[%s1066_s4] sm:$0xff]  ;;  %v403_v36 = vpack.c.bf16 %v983_v34, %v983_v34  ;;  %v730_v41 = vcombine.high %v453_v40, %v453_v40  ;;  %v729_v42 = vcombine.low %v453_v40, %v453_v40 }
  0x2b   :  { %720 = vmatprep.subr.msk.bf16.mxu1 %vm88_vm0, %v719_v5  ;;  %v90_v9 = vsel %vm88_vm0, %v77_v6, 0  ;;  %v67_v12 = vld [vmem:[%s1065_s3] sm:$0xf] }
  0x2c   :  { %96 = vmatpush1.bf16.msra.mxu0 %v90_v9  ;;  %157 = vmatpush1.bf16.msra.mxu1 %v151_v10  ;;  %v954_v13 = vld [vmem:[%s1067_s5] sm:$0xf]  ;;  %v406_v38 = vsel %vm88_vm0, %v403_v36, 0  ;;  %v460_v48 = vsel %vm88_vm0, %v729_v42, 0 }
  0x2d   :  { %v967_v15 = vld [vmem:[%s1064_s2] sm:$0xff]  ;;  %244 = vmatprep.subr.mxu1 %v962_v14 }
  0x2e   :  { %81 = vperm.xlu0 %745, %v70_v11   ;;  %v69_v46 = vld [vmem:[%s1069_s7] sm:$0xf]  ;;  %v1017_v11 = vld [vmem:[%s1064_s2 + $0x18] sm:$0xff] }
  0x2f   :  { %717 = vmatmul.mubr.msk.bf16.vlgmr.msra.gmra.mrb[0].mxu0 %vm84_vm1, %v67_v12  ;;  %721 = vmatmul.mubr.msk.bf16.vlgmr.msra.gmra.mrb[0].mxu1 %vm84_vm1, %v954_v13 }
  0x30   :  { %245 = vmatpush1.msra.mxu1 %v967_v15  ;;  %308 = vmatprep.mubr.f32.mxu1 %v842_v39 }
  0x31   :  { %723 = vmatprep.subr.msk.bf16.mxu1 %vm88_vm0, %v78_v4 }
  0xa9   :  { %v972_v16 = vpop.permute.xlu0 %139 }
  0xad   :  { %v974_v17 = vpop.permute.xlu0 %81 }
 0x102   :  { %v129_v18 = vpop.f32.mrb[0].mxu0  ;;  %v190_v19 = vpop.f32.mrb[0].mxu1 }
 0x103   :  { %v191_v20 = vadd.f32 %v190_v19, %v972_v16  ;;  %v131_v21 = vpop.f32.mrb[1].mxu0  ;;  %v192_v22 = vpop.f32.mrb[1].mxu1  ;;  %v130_v35 = vadd.f32 %v129_v18, %v974_v17 }
 0x104   :  { %v132_v24 = vadd.f32 %v131_v21, %v974_v17  ;;  %v193_v25 = vadd.f32 %v192_v22, %v972_v16  ;;  %v194_v26 = vpop.f32.mrb[2].mxu1  ;;  %v133_v27 = vpop.f32.mrb[2].mxu0 }
 0x105   :  { %v195_v28 = vpop.f32.mrb[3].mxu1  ;;  %v134_v29 = vpop.f32.mrb[3].mxu0  ;;  %v199_v33 = vpack.c.bf16 %v191_v20, %v191_v20  ;;  %v197_v37 = vpack.c.bf16 %v130_v35, %v130_v35 }
 0x106   :  { %v198_v30 = vpack.c.bf16 %v132_v24, %v132_v24  ;;  %v200_v31 = vpack.c.bf16 %v193_v25, %v193_v25 }
 0x108   :  { %201 = vmatprep.subr.bf16.mxu0 %v200_v31  ;;  %233 = vmatprep.mubr.bf16.mxu0 %v198_v30 }
 0x109   :  { %202 = vmatpush1.bf16.xpose.msra.mxu0 %v199_v33 }
 0x10a   :  { %727 = vmatprep.subr.msk.bf16.mxu0 %vm88_vm0, %v404_v32 }
 0x110   :  { %234 = vmatmul.mubr.bf16.vlgmr.msra.gmra.mrb[4].mxu0 %v197_v37 }
 0x111   :  { %412 = vmatpush1.bf16.msra.mxu0 %v406_v38  ;;  %443 = vmatprep.mubr.bf16.mxu0 %v841_v0 }
 0x118   :  { %728 = vmatmul.mubr.msk.bf16.vlgmr.msra.gmra.mrb[8].mxu0 %vm84_vm1, %v67_v12  ;;  %v1022_v12 = vld [vmem:[%s1064_s2 + $0x10] sm:$0xff] }
 0x1e3   :  { %v235_v43 = vpop.f32.mrb[4].mxu0 }
 0x1e4   :  { %v237_v44 = vpop.f32.mrb[5].mxu0  ;;  %722 = vmatmul.mubr.msk.f32.vlgmr.msra.gmra.mrb[4].mxu1 %vm84_vm1, %v235_v43 }
 0x1e5   :  { %v238_v45 = vpop.f32.mrb[6].mxu0  ;;  %342 = vmatpush1.bf16.msra.mxu1 %v90_v9  ;;  %373 = vmatprep.mubr.bf16.mxu1 %v841_v0 }
 0x1e6   :  { %v239_v47 = vpop.f32.mrb[7].mxu0  ;;  %731 = vmatprep.subr.msk.bf16.mxu1 %vm88_vm0, %v730_v41 }
 0x1e8   :  { %724 = vmatmul.mubr.msk.bf16.vlgmr.msra.gmra.mrb[8].mxu1 %vm84_vm1, %v69_v46 }
 0x1e9   :  { %466 = vmatpush1.bf16.msra.mxu1 %v460_v48  ;;  %497 = vmatprep.mubr.bf16.mxu1 %v841_v0  ;;  %v387_v48 = vsub.f32 1.0, %v962_v14 }
 0x1ea   :  { %553 = vmatprep.subr.mxu1 %v1017_v11 }
 0x1eb   :  { %v445_v49 = vpop.f32.mrb[8].mxu0 }
 0x1ec   :  { %v447_v50 = vpop.f32.mrb[9].mxu0  ;;  %v446_v9 = vadd.f32 %v445_v49, %v974_v17  ;;  %v386_v49 = vsub.f32 1.0, %v967_v15 }
 0x1ed   :  { %v448_v51 = vadd.f32 %v447_v50, %v974_v17  ;;  %v449_v52 = vpop.f32.mrb[10].mxu0 }
 0x1ee   :  { %v450_v53 = vpop.f32.mrb[11].mxu0  ;;  %v506_v10 = vpack.c.bf16 %v446_v9, %v446_v9 }
 0x1ef   :  { %v507_v54 = vpack.c.bf16 %v448_v51, %v448_v51  ;;  %v388_v51 = vstv %s1071_s9 }
 0x1f0   :  { %732 = vmatmul.mubr.msk.bf16.vlgmr.msra.gmra.mrb[12].mxu1 %vm84_vm1, %v954_v13  ;;  %v390_v53 = vmul.f32 %v388_v51, %v387_v48 }
 0x1f1   :  { %542 = vmatprep.mubr.bf16.mxu0 %v507_v54  ;;  %617 = vmatprep.mubr.f32.mxu1 %v842_v39  ;;  %v72_v39 = vld [vmem:[%s1070_s8] sm:$0xff]  ;;  %v389_v54 = vmul.f32 %v388_v51, %v386_v49  ;;  %s843_s8 = smov [#allocation8]  }
 0x1f2   :  { %554 = vmatpush1.msra.mxu1 %v1022_v12  ;;  %s703_s9 = sshll.u32 %s843_s8, 4  ;;  %s704_s9 = int_to_ptr.vmem [resolvable:$true] %s703_s9 }
 0x1f3   :  { %s807_s0 = scalar_lea.vmem %s704_s9, 512  ;;  %p812_p3 = scmp.lt.s32.totalorder %s704_s9, %s704_s9 }
 0x1f4   :  { %p808_p2 = scmp.ne.s32.totalorder %s704_s9, %s807_s0  ;;  %p813_p4 = scmp.lt.s32.totalorder %s807_s0, %s807_s0 }
 0x1f6   :  { %p814_p5 = por %p813_p4, %p812_p3 }
 0x1f8   :  { %p815_p6 = pnand %p814_p5, %p808_p2 }
 0x2b7   :  { %v310_v55 = vpop.f32.mrb[4].mxu1 }
 0x2b8   :  { %v312_v56 = vpop.f32.mrb[5].mxu1 }
 0x2b9   :  { %v315_v57 = vmax.f32 %v310_v55, %v312_v56 }
 0x2bb   :  { %v1004_v58 = vpop.f32.mrb[8].mxu1  ;;  %316 = vmax.xlane.f32.xlu1 %v315_v57 }
 0x2bc   :  { %v1006_v59 = vpop.f32.mrb[9].mxu1 }
 0x2bd   :  { %v379_v60 = vpop.f32.mrb[10].mxu1 }
 0x2be   :  { %v380_v61 = vpop.f32.mrb[11].mxu1 }
 0x2c3   :  { %v499_v62 = vpop.f32.mrb[12].mxu1 }
 0x2c4   :  { %v500_v63 = vadd.f32 %v499_v62, %v972_v16  ;;  %v501_v2 = vpop.f32.mrb[13].mxu1  ;;  %v385_v62 = vmul.f32 %v962_v14, %v930_v1 }
 0x2c5   :  { %v502_v4 = vadd.f32 %v501_v2, %v972_v16  ;;  %v503_v5 = vpop.f32.mrb[14].mxu1 }
 0x2c6   :  { %v504_v6 = vpop.f32.mrb[15].mxu1  ;;  %v508_v8 = vpack.c.bf16 %v500_v63, %v500_v63  ;;  %v384_v63 = vmul.f32 %v967_v15, %v932_v3 }
 0x2c7   :  { %v509_v7 = vpack.c.bf16 %v502_v4, %v502_v4 }
 0x2c9   :  { %510 = vmatprep.subr.bf16.mxu0 %v509_v7 }
 0x2ca   :  { %511 = vmatpush1.bf16.xpose.msra.mxu0 %v508_v8 }
 0x2cb   :  { %734 = vmatprep.subr.msk.bf16.mxu0 %vm88_vm0, %v404_v32 }
 0x2d1   :  { %543 = vmatmul.mubr.bf16.vlgmr.msra.gmra.mrb[12].mxu0 %v506_v10 }
 0x2d2   :  { %643 = vmatpush1.bf16.msra.mxu0 %v406_v38  ;;  %674 = vmatprep.mubr.bf16.mxu0 %v841_v0 }
 0x2d9   :  { %735 = vmatmul.mubr.msk.bf16.vlgmr.msra.gmra.mrb[16].mxu0 %vm84_vm1, %v69_v46 }
 0x348   :  { %v317_v13 = vpop.xlane.xlu1 %316 }
 0x349   :  { %v318_v16 = vsub.f32 %v310_v55, %v317_v13  ;;  %v319_v17 = vsub.f32 %v312_v56, %v317_v13 }
 0x34b   :  { %v320_v0 = vmul.f32 1.442695, %v318_v16  ;;  %v322_v18 = vmul.f32 1.442695, %v319_v17 }
 0x34d   :  { %751 = vpow2.f32 %v320_v0 }
 0x34e   :  { %753 = vpow2.f32 %v322_v18  ;;  %v686_v18 = vmul.f32 %v1017_v11, %v977_v23 }
 0x357   :  { %v752_v19 = vpop.eup %751 }
 0x358   :  { %v754_v20 = vpop.eup %753 }
 0x359   :  { %v324_v21 = vadd.f32 %v754_v20, %v752_v19 }
 0x35b   :  { %325 = vadd.xlane.f32.xlu0 %v324_v21 }
 0x3a4   :  { %v544_v22 = vpop.f32.mrb[12].mxu0 }
 0x3a5   :  { %v546_v24 = vpop.f32.mrb[13].mxu0  ;;  %733 = vmatmul.mubr.msk.f32.vlgmr.msra.gmra.mrb[6].mxu1 %vm84_vm1, %v544_v22 }
 0x3a6   :  { %v547_v25 = vpop.f32.mrb[14].mxu0 }
 0x3a7   :  { %v548_v26 = vpop.f32.mrb[15].mxu0 }
 0x3ac   :  { %v676_v40 = vpop.f32.mrb[16].mxu0 }
 0x3ad   :  { %v678_v41 = vpop.f32.mrb[17].mxu0 }
 0x3ae   :  { %v680_v42 = vpop.f32.mrb[18].mxu0 }
 0x3af   :  { %v681_v43 = vpop.f32.mrb[19].mxu0 }
 0x3e8   :  { %v326_v44 = vpop.xlane.xlu0 %325 }
 0x478   :  { %v619_v27 = vpop.f32.mrb[6].mxu1 }
 0x479   :  { %v621_v28 = vpop.f32.mrb[7].mxu1 }
 0x47a   :  { %v624_v29 = vmax.f32 %v619_v27, %v621_v28 }
 0x47c   :  { %625 = vmax.xlane.f32.xlu1 %v624_v29 }
 0x509   :  { %v626_v30 = vpop.xlane.xlu1 %625 }
 0x50a   :  { %v627_v31 = vsub.f32 %v619_v27, %v626_v30  ;;  %v628_v32 = vsub.f32 %v621_v28, %v626_v30 }
 0x50c   :  { %v629_v33 = vmul.f32 1.442695, %v627_v31  ;;  %v631_v35 = vmul.f32 1.442695, %v628_v32 }
 0x50e   :  { %755 = vpow2.f32 %v629_v33 }
 0x50f   :  { %757 = vpow2.f32 %v631_v35 }
 0x510   :  { %759 = vrcp.f32 %v326_v44 }
 0x518   :  { %v756_v36 = vpop.eup %755 }
 0x519   :  { %v758_v37 = vpop.eup %757 }
 0x51a   :  { %v633_v38 = vadd.f32 %v758_v37, %v756_v36  ;;  %v760_v45 = vpop.eup %759 }
 0x51b   :  { %v328_v46 = vmul.f32 %v760_v45, %v326_v44 }
 0x51c   :  { %634 = vadd.xlane.f32.xlu1 %v633_v38 }
 0x51d   :  { %v329_v47 = vsub.f32 2.0, %v328_v46 }
 0x51f   :  { %v330_v52 = vmul.f32 %v760_v45, %v329_v47 }
 0x521   :  { %v331_v56 = vmul.f32 %v752_v19, %v330_v52  ;;  %v332_v57 = vmul.f32 %v754_v20, %v330_v52  ;;  %v685_v19 = vmul.f32 %v1022_v12, %v983_v34 }
 0x52d   :  { %335 = vperm.xlu1 %746, %v72_v39  }
 0x5a9   :  { %v635_v50 = vpop.xlane.xlu1 %634 }
 0x5aa   :  { %761 = vrcp.f32 %v635_v50 }
 0x5ad   :  { %v336_v55 = vpop.permute.xlu1 %335 }
 0x5ae   :  { %v376_v60 = vadd.f32 %v1004_v58, %v336_v55  ;;  %v378_v61 = vadd.f32 %v1006_v59, %v336_v55  ;;  %v688_v58 = vsub.f32 1.0, %v1017_v11  ;;  %v687_v59 = vsub.f32 1.0, %v1022_v12 }
 0x5af   :  { %v677_v1 = vadd.f32 %v676_v40, %v336_v55  ;;  %v679_v14 = vadd.f32 %v678_v41, %v336_v55 }
 0x5b0   :  { %v382_v2 = vmul.f32 %v376_v60, %v331_v56  ;;  %v383_v4 = vmul.f32 %v378_v61, %v332_v57  ;;  %v690_v17 = vmul.f32 %v688_v58, %v388_v51  ;;  %v689_v15 = vmul.f32 %v687_v59, %v388_v51 }
 0x5b2   :  { %v391_v5 = vmul.f32 %v389_v54, %v382_v2  ;;  %v392_v6 = vmul.f32 %v390_v53, %v383_v4 }
 0x5b4   :  { %v762_v7 = vpop.eup %761  ;;  %v393_v8 = vadd.f32 %v391_v5, %v384_v63  ;;  %v394_v9 = vadd.f32 %v392_v6, %v385_v62 }
 0x5b5   :  { %v637_v10 = vmul.f32 %v762_v7, %v635_v50 }
 0x5b6   :  { %395 = vst [vmem:[#allocation8] sm:$0xff] %v393_v8  ;;  %396 = vst [vmem:[#allocation8 + $0x8] sm:$0xff] %v394_v9 }
 0x5b7   :  { %v638_v13 = vsub.f32 2.0, %v637_v10 }
 0x5b9   :  { %v639_v16 = vmul.f32 %v762_v7, %v638_v13 }
 0x5bb   :  { %v640_v3 = vmul.f32 %v756_v36, %v639_v16  ;;  %v641_v0 = vmul.f32 %v758_v37, %v639_v16 }
 0x5bd   :  { %v683_v20 = vmul.f32 %v677_v1, %v640_v3  ;;  %v684_v21 = vmul.f32 %v679_v14, %v641_v0 }
 0x5bf   :  { %v691_v22 = vmul.f32 %v689_v15, %v683_v20  ;;  %v692_v24 = vmul.f32 %v690_v17, %v684_v21 }
 0x5c1   :  { %v693_v25 = vadd.f32 %v691_v22, %v685_v19  ;;  %v694_v26 = vadd.f32 %v692_v24, %v686_v18 }
 0x5c3   :  { %696 = vst [vmem:[#allocation8 + $0x10] sm:$0xff] %v693_v25  ;;  %697 = vst [vmem:[#allocation8 + $0x18] sm:$0xff] %v694_v26 }
 0x5c4   :  { %818 = shalt.err (!%p815_p6)
}
 0x5c5   :  { %s819_s19 = scalar_lea.hbm %s1072_s10, 512 }
 0x5c6   :  { %p820_p7 = scmp.ne.s32.totalorder %s1072_s10, %s819_s19  ;;  %p823_p8 = scmp.lt.u32.totalorder %s819_s19, %s1072_s10 }
 0x5c8   :  { %p825_p9 = pnand %p823_p8, %p820_p7 }
 0x5ca   :  { %828 = shalt.err (!%p825_p9)
}
 0x5cb   :  { %709 = dma.vmem_to_hbm [thread:$0]  %s704_s9, 512, %s1072_s10, [#allocation5], %s836_s23, %s836_s23, %s837_s24  }
 0x5cc   :  { %833 = dma.done.wait [#allocation5], 512  }
 0x5cd   :  { %834 = vsyncadd [#allocation5], 4294966784 }
 0x5ce   :  { %713 = vsyncpa [#allocation4], 1 }
 0x5cf   :  { %714 = vsyncpa [#allocation7], 1 }
 0x5d0   :  { %715 = vsyncpa [#allocation5], 1 }

</bundles_post_ra>
